<compile_context>
chip_gen: v6e
topology: v6e:2x2x1
jax: 0.10.0
libtpu: 0.0.40
codegen_flags: <defaults>
</compile_context>

<pallas_src>
import jax
import jax.numpy as jnp
from jax.experimental import pallas as pl
from jax.experimental.pallas import tpu as pltpu

EMBED = 64
H1 = 512
H2 = 256
OUT = 1
NEG_SLOPE = 0.2


def _leaky_relu(x):
    # slope < 1  =>  leaky_relu(x) == max(x, slope*x); saves one VALU op/vreg.
    return jnp.maximum(x, NEG_SLOPE * x)


def _disc_kernel(x_ref, w1_ref, b1_ref, w2_ref, b2_ref, w3_ref, b3_ref, o_ref):
    """One batch tile of the 3-layer MLP.

    x_ref : (tb, 64)    f32  batch tile (cast to bf16 here, on the VPU)
    w1_ref: (64, 512)   bf16 resident     b1_ref: (1, 512) f32
    w2_ref: (512, 256)  bf16 resident     b2_ref: (1, 256) f32
    w3_ref: (1, 256)    f32  resident     b3_ref: (1, 1)   f32
    o_ref : (1, 1, tb)  f32  lane-dense output block
    """
    x = x_ref[...].astype(jnp.bfloat16)

    # Layer 1 (MXU, K=64): bf16 x bf16 -> f32 accumulate, bias + LeakyReLU in f32.
    h1 = jnp.dot(x, w1_ref[...], preferred_element_type=jnp.float32) + b1_ref[...]
    h1 = _leaky_relu(h1)

    # Layer 2 (MXU): bf16 x bf16 -> f32 accumulate.
    h2 = jnp.dot(h1.astype(jnp.bfloat16), w2_ref[...],
                 preferred_element_type=jnp.float32) + b2_ref[...]
    h2 = _leaky_relu(h2)                                     # (tb, 256) f32

    # Layer 3 (MXU, N=1) as an NT matmul: (1,256) . (tb,256)^T -> (1, tb).
    # Result comes out lane-dense directly (no (tb,1)->(1,tb) relayout, no
    # masked narrow stores) and keeps the VPU free for the LeakyReLU work.
    out = jax.lax.dot_general(
        w3_ref[...], h2, (((1,), (1,)), ((), ())),
        preferred_element_type=jnp.float32) + b3_ref[...]    # (1, tb) f32
    o_ref[0] = out.astype(o_ref.dtype)


def _round_down(x, m):
    return (x // m) * m


def _pick_tb(batch):
    """Rows per grid step: multiple of 8 (sublane/MXU friendly), >= 2 grid
    steps whenever the batch allows it (keeps both v7x TensorCores busy),
    capped at 1024 so per-step VMEM (f32 h1/h2 intermediates + double-buffered
    x) stays far below every generation's scoped VMEM default
    (v5e 16 MiB, v6e/v7x 32 MiB)."""
    if batch <= 8:
        return batch                       # single block == full array (legal)
    if batch <= 256:
        return max(8, _round_down(pl.cdiv(batch, 2), 8))
    if batch <= 2048:
        return max(128, _round_down(pl.cdiv(batch, 2), 128))
    return 1024


def prepare_params(params):
    """One-time cast/reshape of the Linear parameters (do NOT redo per call).

    params = (w1 (64,512), b1 (512,), w2 (512,256), b2 (256,), w3 (256,1), b3 (1,))
    with weights stored as (in_features, out_features).
    """
    w1, b1, w2, b2, w3, b3 = params
    return (
        w1.astype(jnp.bfloat16),                      # (64, 512)
        b1.reshape(1, H1).astype(jnp.float32),        # (1, 512)
        w2.astype(jnp.bfloat16),                      # (512, 256)
        b2.reshape(1, H2).astype(jnp.float32),        # (1, 256)
        w3.reshape(1, H2).astype(jnp.float32),        # (256,1)->(1,256); valid since OUT == 1
        b3.reshape(1, OUT).astype(jnp.float32),       # (1, 1)
    )


def discriminator_wgan_sawyer(embedding, prepared_params, *, tb=None):
    """embedding: (B, 64) float32.  Returns (B, 1) float32."""
    B, E = embedding.shape
    assert E == EMBED
    w1p, b1p, w2p, b2p, w3p, b3p = prepared_params

    tb = _pick_tb(B) if tb is None else tb
    nt = pl.cdiv(B, tb)
    rows = nt * tb          # rows actually computed; garbage tail rows sliced off

    flops = 2 * rows * (EMBED * H1 + H1 * H2 + H2 * OUT)
    bytes_accessed = (
        rows * EMBED * jnp.dtype(embedding.dtype).itemsize     # x read (no pad, no cast pass)
        + sum(int(a.size) * a.dtype.itemsize
              for a in (w1p, b1p, w2p, b2p, w3p, b3p))          # resident weights
        + rows * OUT * 4)                                       # lane-dense output

    resident = lambda shape: pl.BlockSpec(shape, lambda i: (0, 0))

    out = pl.pallas_call(
        _disc_kernel,
        out_shape=jax.ShapeDtypeStruct((nt, 1, tb), jnp.float32),
        grid_spec=pltpu.PrefetchScalarGridSpec(
            num_scalar_prefetch=0,
            grid=(nt,),
            in_specs=[
                pl.BlockSpec((tb, EMBED), lambda i: (i, 0)),    # x tile (f32, un-padded)
                resident((EMBED, H1)),                          # w1 bf16
                resident((1, H1)),                              # b1 f32
                resident((H1, H2)),                             # w2 bf16
                resident((1, H2)),                              # b2 f32
                resident((1, H2)),                              # w3 row f32
                resident((1, OUT)),                             # b3 f32
            ],
            out_specs=pl.BlockSpec((1, 1, tb), lambda i: (i, 0, 0)),
        ),
        compiler_params=pltpu.CompilerParams(
            dimension_semantics=("parallel",)),
        cost_estimate=pl.CostEstimate(
            flops=flops, transcendentals=0, bytes_accessed=bytes_accessed),
    )(embedding, w1p, b1p, w2p, b2p, w3p, b3p)

    return out.reshape(rows)[:B].reshape(B, OUT)


def init_params(key):
    """PyTorch default nn.Linear init: U(-1/sqrt(fan_in), 1/sqrt(fan_in)) for
    both weight and bias.  Weights stored as (in_features, out_features)."""
    ks = jax.random.split(key, 6)

    def lin(kw, kb, fan_in, fan_out):
        bound = 1.0 / (fan_in ** 0.5)
        w = jax.random.uniform(kw, (fan_in, fan_out), jnp.float32, -bound, bound)
        b = jax.random.uniform(kb, (fan_out,), jnp.float32, -bound, bound)
        return w, b

    w1, b1 = lin(ks[0], ks[1], EMBED, H1)
    w2, b2 = lin(ks[2], ks[3], H1, H2)
    w3, b3 = lin(ks[4], ks[5], H2, OUT)
    return (w1, b1, w2, b2, w3, b3)


def reference(embedding, params):
    """Pure-JAX reference with matching bf16-input / f32-accumulate numerics."""
    w1, b1, w2, b2, w3, b3 = params
    x = embedding.astype(jnp.bfloat16)
    h1 = jnp.dot(x, w1.astype(jnp.bfloat16),
                 preferred_element_type=jnp.float32) + b1
    h1 = jax.nn.leaky_relu(h1, negative_slope=NEG_SLOPE)
    h2 = jnp.dot(h1.astype(jnp.bfloat16), w2.astype(jnp.bfloat16),
                 preferred_element_type=jnp.float32) + b2
    h2 = jax.nn.leaky_relu(h2, negative_slope=NEG_SLOPE)
    return jnp.dot(h2, w3, precision=jax.lax.Precision.HIGHEST) + b3


if __name__ == "__main__":
    key = jax.random.PRNGKey(0)
    k_params, k_x = jax.random.split(key)

    B = 8   # small demo batch; any B works (partial edge tiles are handled)
    params = init_params(k_params)
    prepared = prepare_params(params)   # one-time weight cast/reshape
    x = jax.random.normal(k_x, (B, EMBED), jnp.float32)

    out = discriminator_wgan_sawyer(x, prepared)
    out = jax.block_until_ready(out)

    ref = reference(x, params)
    assert out.shape == (B, OUT)
    assert jnp.allclose(out, ref, atol=2e-2, rtol=2e-2), (
        f"max abs diff {jnp.max(jnp.abs(out - ref))}")

    print("KERNEL_OK")
</pallas_src>

<mosaic_0001>
module attributes {stable_mosaic.version = 11 : i64} {
  func.func @_disc_kernel(%arg0: i32, %arg1: memref<8x64xf32, #tpu.memory_space<vmem>>, %arg2: memref<64x512xbf16, #tpu.memory_space<vmem>>, %arg3: memref<1x512xf32, #tpu.memory_space<vmem>>, %arg4: memref<512x256xbf16, #tpu.memory_space<vmem>>, %arg5: memref<1x256xf32, #tpu.memory_space<vmem>>, %arg6: memref<1x256xf32, #tpu.memory_space<vmem>>, %arg7: memref<1x1xf32, #tpu.memory_space<vmem>>, %arg8: memref<1x1x8xf32, #tpu.memory_space<vmem>>) attributes {dimension_semantics = [#tpu.dimension_semantics<parallel>], iteration_bounds = array<i64: 1>, scalar_prefetch = 0 : i64, scratch_operands = 0 : i64, tpu.core_type = #tpu.core_type<tc>, window_params = [{transform_indices = @transform_0, window_bounds = array<i64: 8, 64>}, {pipeline_mode = #tpu.pipeline_mode<synchronous>, transform_indices = @transform_1, window_bounds = array<i64: 64, 512>}, {pipeline_mode = #tpu.pipeline_mode<synchronous>, transform_indices = @transform_2, window_bounds = array<i64: 1, 512>}, {pipeline_mode = #tpu.pipeline_mode<synchronous>, transform_indices = @transform_3, window_bounds = array<i64: 512, 256>}, {pipeline_mode = #tpu.pipeline_mode<synchronous>, transform_indices = @transform_4, window_bounds = array<i64: 1, 256>}, {pipeline_mode = #tpu.pipeline_mode<synchronous>, transform_indices = @transform_5, window_bounds = array<i64: 1, 256>}, {pipeline_mode = #tpu.pipeline_mode<synchronous>, transform_indices = @transform_6, window_bounds = array<i64: 1, 1>}, {transform_indices = @transform_7, window_bounds = array<i64: 1, 1, 8>}]} {
    %c0 = arith.constant 0 : index
    %c0_0 = arith.constant 0 : index
    %0 = vector.load %arg1[%c0, %c0_0] : memref<8x64xf32, #tpu.memory_space<vmem>>, vector<8x64xf32>
    %1 = arith.truncf %0 : vector<8x64xf32> to vector<8x64xbf16>
    %c0_1 = arith.constant 0 : index
    %c0_2 = arith.constant 0 : index
    %2 = vector.load %arg2[%c0_1, %c0_2] : memref<64x512xbf16, #tpu.memory_space<vmem>>, vector<64x512xbf16>
    %cst = arith.constant dense<0.000000e+00> : vector<8x512xf32>
    %3 = tpu.matmul %1, %2, %cst {dimension_numbers = #tpu.dot_dimension_numbers<[1], [0], [0], [1], [0, 0, 1, 1], [], []>} : vector<8x64xbf16>, vector<64x512xbf16>, vector<8x512xf32> -> vector<8x512xf32>
    %c0_3 = arith.constant 0 : index
    %c0_4 = arith.constant 0 : index
    %4 = vector.load %arg3[%c0_3, %c0_4] : memref<1x512xf32, #tpu.memory_space<vmem>>, vector<1x512xf32>
    %5 = vector.broadcast %4 : vector<1x512xf32> to vector<8x512xf32>
    %6 = arith.addf %3, %5 : vector<8x512xf32>
    %cst_5 = arith.constant 2.000000e-01 : f32
    %7 = vector.broadcast %cst_5 : f32 to vector<8x512xf32>
    %8 = arith.mulf %7, %6 : vector<8x512xf32>
    %9 = arith.maximumf %6, %8 : vector<8x512xf32>
    %10 = arith.truncf %9 : vector<8x512xf32> to vector<8x512xbf16>
    %c0_6 = arith.constant 0 : index
    %c0_7 = arith.constant 0 : index
    %11 = vector.load %arg4[%c0_6, %c0_7] : memref<512x256xbf16, #tpu.memory_space<vmem>>, vector<512x256xbf16>
    %cst_8 = arith.constant dense<0.000000e+00> : vector<8x256xf32>
    %12 = tpu.matmul %10, %11, %cst_8 {dimension_numbers = #tpu.dot_dimension_numbers<[1], [0], [0], [1], [0, 0, 1, 1], [], []>} : vector<8x512xbf16>, vector<512x256xbf16>, vector<8x256xf32> -> vector<8x256xf32>
    %c0_9 = arith.constant 0 : index
    %c0_10 = arith.constant 0 : index
    %13 = vector.load %arg5[%c0_9, %c0_10] : memref<1x256xf32, #tpu.memory_space<vmem>>, vector<1x256xf32>
    %14 = vector.broadcast %13 : vector<1x256xf32> to vector<8x256xf32>
    %15 = arith.addf %12, %14 : vector<8x256xf32>
    %cst_11 = arith.constant 2.000000e-01 : f32
    %16 = vector.broadcast %cst_11 : f32 to vector<8x256xf32>
    %17 = arith.mulf %16, %15 : vector<8x256xf32>
    %18 = arith.maximumf %15, %17 : vector<8x256xf32>
    %c0_12 = arith.constant 0 : index
    %c0_13 = arith.constant 0 : index
    %19 = vector.load %arg6[%c0_12, %c0_13] : memref<1x256xf32, #tpu.memory_space<vmem>>, vector<1x256xf32>
    %cst_14 = arith.constant dense<0.000000e+00> : vector<1x8xf32>
    %20 = tpu.matmul %19, %18, %cst_14 {dimension_numbers = #tpu.dot_dimension_numbers<[1], [1], [0], [0], [0, 0, 1, 0], [], []>} : vector<1x256xf32>, vector<8x256xf32>, vector<1x8xf32> -> vector<1x8xf32>
    %c0_15 = arith.constant 0 : index
    %c0_16 = arith.constant 0 : index
    %21 = vector.load %arg7[%c0_15, %c0_16] : memref<1x1xf32, #tpu.memory_space<vmem>>, vector<1x1xf32>
    %22 = vector.broadcast %21 : vector<1x1xf32> to vector<1x8xf32>
    %23 = arith.addf %20, %22 : vector<1x8xf32>
    %c0_17 = arith.constant 0 : index
    %c0_18 = arith.constant 0 : index
    %c0_19 = arith.constant 0 : index
    %24 = vector.load %arg8[%c0_17, %c0_18, %c0_19] : memref<1x1x8xf32, #tpu.memory_space<vmem>>, vector<1x1x8xf32>
    %25 = vector.shape_cast %24 : vector<1x1x8xf32> to vector<1x8xf32>
    %26 = vector.shape_cast %23 : vector<1x8xf32> to vector<1x1x8xf32>
    tpu.vector_store %arg8[%c0_17, %c0_18, %c0_19], %26 {strides = array<i32>} : memref<1x1x8xf32, #tpu.memory_space<vmem>>, vector<1x1x8xf32>,
    return
  }
  func.func @transform_0(%arg0: i32) -> (i32, i32) {
    %c0_i32 = arith.constant 0 : i32
    %c0_i32_0 = arith.constant 0 : i32
    return %arg0, %c0_i32 : i32, i32
  }
  func.func @transform_1(%arg0: i32) -> (i32, i32) {
    %c0_i32 = arith.constant 0 : i32
    %c0_i32_0 = arith.constant 0 : i32
    %c0_i32_1 = arith.constant 0 : i32
    return %c0_i32, %c0_i32_0 : i32, i32
  }
  func.func @transform_2(%arg0: i32) -> (i32, i32) {
    %c0_i32 = arith.constant 0 : i32
    %c0_i32_0 = arith.constant 0 : i32
    %c0_i32_1 = arith.constant 0 : i32
    return %c0_i32, %c0_i32_0 : i32, i32
  }
  func.func @transform_3(%arg0: i32) -> (i32, i32) {
    %c0_i32 = arith.constant 0 : i32
    %c0_i32_0 = arith.constant 0 : i32
    %c0_i32_1 = arith.constant 0 : i32
    return %c0_i32, %c0_i32_0 : i32, i32
  }
  func.func @transform_4(%arg0: i32) -> (i32, i32) {
    %c0_i32 = arith.constant 0 : i32
    %c0_i32_0 = arith.constant 0 : i32
    %c0_i32_1 = arith.constant 0 : i32
    return %c0_i32, %c0_i32_0 : i32, i32
  }
  func.func @transform_5(%arg0: i32) -> (i32, i32) {
    %c0_i32 = arith.constant 0 : i32
    %c0_i32_0 = arith.constant 0 : i32
    %c0_i32_1 = arith.constant 0 : i32
    return %c0_i32, %c0_i32_0 : i32, i32
  }
  func.func @transform_6(%arg0: i32) -> (i32, i32) {
    %c0_i32 = arith.constant 0 : i32
    %c0_i32_0 = arith.constant 0 : i32
    %c0_i32_1 = arith.constant 0 : i32
    return %c0_i32, %c0_i32_0 : i32, i32
  }
  func.func @transform_7(%arg0: i32) -> (i32, i32, i32) {
    %c0_i32 = arith.constant 0 : i32
    %c0_i32_0 = arith.constant 0 : i32
    %c0_i32_1 = arith.constant 0 : i32
    return %arg0, %c0_i32, %c0_i32_0 : i32, i32, i32
  }
}

</mosaic_0001>

<bundles_post_ra>
// kernel: tpu_custom_call.1
= control target key start
LH: loop header
LB: loop body
LE: loop exit
PB: predicated region body
PF: predicated region fallthrough
CT: control target
= control target key end

     0   :  { %s1256_s0 = inlined_call_operand.hbm [shape: f32[8,64], index: 0, kind: input, shape index: {}]   ;;  %s1257_s1 = inlined_call_operand.hbm [shape: bf16[64,512], index: 1, kind: input, shape index: {}]   ;;  %s1258_s2 = inlined_call_operand.vmem [shape: f32[1,512], index: 2, kind: input, shape index: {}]   ;;  %s1259_s3 = inlined_call_operand.hbm [shape: bf16[512,256], index: 3, kind: input, shape index: {}]   ;;  %s1260_s4 = inlined_call_operand.vmem [shape: f32[1,256], index: 4, kind: input, shape index: {}]   ;;  %s1261_s5 = inlined_call_operand.vmem [shape: f32[1,256], index: 5, kind: input, shape index: {}]   ;;  %s1262_s6 = inlined_call_operand.<no memory space> [shape: f32[1,1], index: 6, kind: input, shape index: {}]   ;;  %s1263_s7 = inlined_call_operand.hbm [shape: f32[1,1,8], index: 7, kind: output, shape index: {}]  }
   0x1   :  { %v12_v0 = vstv %s1262_s6 }
   0x2   :  { %13 = vst [vmem:[#allocation2] sm:$0x1] %v12_v0 }
   0x3   :  { %14 = vsyncpa [#allocation4], 0 }
   0x4   :  { %15 = vsyncpa [#allocation7], 0 }
   0x5   :  { %16 = vsyncpa [#allocation5], 0  ;;  %s1177_s26 = smov [#allocation6]  }
   0x6   :  { %s32_s27 = sshll.u32 %s1177_s26, 4  ;;  %s33_s27 = int_to_ptr.vmem [resolvable:$true] %s32_s27 }
   0x7   :  { %s1099_s28 = scalar_lea.vmem %s33_s27, 2048  ;;  %p1104_p1 = scmp.lt.s32.totalorder %s33_s27, %s33_s27 }
   0x8   :  { %p1100_p0 = scmp.ne.s32.totalorder %s33_s27, %s1099_s28  ;;  %p1105_p2 = scmp.lt.s32.totalorder %s1099_s28, %s1099_s28 }
   0xa   :  { %p1106_p3 = por %p1105_p2, %p1104_p1 }
   0xc   :  { %p1107_p4 = pnand %p1106_p3, %p1100_p0 }
   0xe   :  { %1110 = shalt.err (!%p1107_p4)
}
   0xf   :  { %s1178_s29 = smov 256   ;;  %s1179_s30 = smov 16  }
  0x10   :  { %38 = dma.hbm_to_vmem [thread:$0]  %s1257_s1, 2048, %s33_s27, [#allocation7], %s1178_s29, %s1178_s29, %s1179_s30  }
  0x11   :  { %s1180_s6 = smov [#allocation3]   ;;  %s1181_s11 = smov [#allocation8]  }
  0x12   :  { %s23_s10 = sshll.u32 %s1180_s6, 4  ;;  %s46_s12 = sshll.u32 %s1181_s11, 4  ;;  %s24_s10 = int_to_ptr.vmem [resolvable:$true] %s23_s10  ;;  %s47_s12 = int_to_ptr.vmem [resolvable:$true] %s46_s12 }
  0x13   :  { %s1119_s13 = scalar_lea.vmem %s24_s10, 128  ;;  %p1124_p6 = scmp.lt.s32.totalorder %s24_s10, %s24_s10 }
  0x14   :  { %p1120_p5 = scmp.ne.s32.totalorder %s24_s10, %s1119_s13  ;;  %p1125_p7 = scmp.lt.s32.totalorder %s1119_s13, %s1119_s13 }
  0x16   :  { %p1126_p8 = por %p1125_p7, %p1124_p6 }
  0x18   :  { %p1127_p9 = pnand %p1126_p8, %p1120_p5 }
  0x1a   :  { %1130 = shalt.err (!%p1127_p9)
}
  0x1b   :  { %26 = dma.hbm_to_vmem [thread:$0]  %s1256_s0, 128, %s24_s10, [#allocation4]  }
  0x1c   :  { %s1139_s16 = scalar_lea.vmem %s47_s12, 8192  ;;  %p1144_p11 = scmp.lt.s32.totalorder %s47_s12, %s47_s12 }
  0x1d   :  { %p1140_p10 = scmp.ne.s32.totalorder %s47_s12, %s1139_s16  ;;  %p1145_p12 = scmp.lt.s32.totalorder %s1139_s16, %s1139_s16 }
  0x1f   :  { %p1146_p13 = por %p1145_p12, %p1144_p11 }
  0x21   :  { %p1147_p0 = pnand %p1146_p13, %p1140_p10 }
  0x23   :  { %1150 = shalt.err (!%p1147_p0)
}
  0x24   :  { %s1182_s1 = smov 128   ;;  %s1183_s17 = smov 8  }
  0x25   :  { %52 = dma.hbm_to_vmem [thread:$0]  %s1259_s3, 8192, %s47_s12, [#allocation7], %s1182_s1, %s1182_s1, %s1183_s17  }
  0x26   :  { %1171 = dma.done.wait [#allocation4], 128  }
  0x27   :  { %1172 = vsyncadd [#allocation4], 4294967168 }
  0x28   :  { %1173 = dma.done.wait [#allocation7], 10240  }
  0x29   :  { %1174 = vsyncadd [#allocation7], 4294957056  ;;  %v1184_v1 = vmov 0   ;;  %v971_v2 = vld [vmem:[#allocation6 + $0x64] ss:$16 sps:$4 sm:$0xff]   ;;  %v69_v18 = vld [vmem:[#allocation3] sm:$0xff] }
  0x2a   :  { %225 = vmatprep.mubr.bf16.mxu0 %v1184_v1  ;;  %266 = vmatprep.mubr.bf16.mxu1 %v1184_v1  ;;  %v973_v3 = vld [vmem:[#allocation6 + $0x6c] ss:$16 sps:$4 sm:$0xff]   ;;  %v975_v4 = vld [vmem:[#allocation6 + $0x60] ss:$16 sps:$4 sm:$0xff]   ;;  %v976_v5 = vld [vmem:[#allocation6 + $0x68] ss:$16 sps:$4 sm:$0xff]   ;;  %v70_v21 = vpack.c.bf16 %v69_v18, %v69_v18 }
  0x2b   :  { %970 = vset.pattern.permute.xlu0 %v1184_v1  ;;  %201 = vmatprep.subr.bf16.mxu0 %v971_v2  ;;  %v977_v6 = vld [vmem:[#allocation6 + $0x44] ss:$16 sps:$4 sm:$0xff]   ;;  %v979_v7 = vld [vmem:[#allocation6 + $0x4c] ss:$16 sps:$4 sm:$0xff]   ;;  %v981_v8 = vld [vmem:[#allocation6 + $0x40] ss:$16 sps:$4 sm:$0xff]  }
  0x2c   :  { %242 = vmatprep.subr.bf16.mxu1 %v973_v3  ;;  %202 = vmatpush1.bf16.msra.mxu0 %v975_v4  ;;  %v982_v9 = vld [vmem:[#allocation6 + $0x48] ss:$16 sps:$4 sm:$0xff]   ;;  %v983_v10 = vld [vmem:[#allocation6 + $0x24] ss:$16 sps:$4 sm:$0xff]   ;;  %v985_v11 = vld [vmem:[#allocation6 + $0x2c] ss:$16 sps:$4 sm:$0xff]  }
  0x2d   :  { %243 = vmatpush1.bf16.msra.mxu1 %v976_v5  ;;  %203 = vmatprep.subr.bf16.mxu0 %v977_v6  ;;  %v987_v12 = vld [vmem:[#allocation6 + $0x20] ss:$16 sps:$4 sm:$0xff]   ;;  %v988_v13 = vld [vmem:[#allocation6 + $0x28] ss:$16 sps:$4 sm:$0xff]   ;;  %v989_v14 = vld [vmem:[#allocation6 + $0x4] ss:$16 sps:$4 sm:$0xff]  }
  0x2e   :  { %244 = vmatprep.subr.bf16.mxu1 %v979_v7  ;;  %v991_v15 = vld [vmem:[#allocation6 + $0xc] ss:$16 sps:$4 sm:$0xff]   ;;  %v993_v16 = vld [vmem:[#allocation6] ss:$16 sps:$4 sm:$0xff]   ;;  %v994_v17 = vld [vmem:[#allocation6 + $0x8] ss:$16 sps:$4 sm:$0xff]  }
  0x2f   :  { %v997_v19 = vld [vmem:[#allocation8 + $0x74] ss:$8 sps:$4 sm:$0xff]   ;;  %v995_v22 = vld [vmem:[#allocation8 + $0x70] ss:$8 sps:$4 sm:$0xff]   ;;  %vm189_vm0 = vcmask 523264   ;;  %vm861_vm1 = vcmask 57344  }
  0x30   :  { %204 = vmatpush1.bf16.msra.mxu0 %v981_v8  ;;  %v1000_v20 = vld [vmem:[#allocation8 + $0x174] ss:$8 sps:$4 sm:$0xff]   ;;  %v998_v23 = vld [vmem:[#allocation8 + $0x170] ss:$8 sps:$4 sm:$0xff]   ;;  %v1003_v24 = vld [vmem:[#allocation8 + $0x64] ss:$8 sps:$4 sm:$0xff]  }
  0x31   :  { %245 = vmatpush1.bf16.msra.mxu1 %v982_v9  ;;  %205 = vmatprep.subr.bf16.mxu0 %v983_v10  ;;  %v1006_v25 = vld [vmem:[#allocation8 + $0x164] ss:$8 sps:$4 sm:$0xff]   ;;  %v1001_v26 = vld [vmem:[#allocation8 + $0x60] ss:$8 sps:$4 sm:$0xff]   ;;  %v1009_v28 = vld [vmem:[#allocation8 + $0x54] ss:$8 sps:$4 sm:$0xff]  }
  0x32   :  { %246 = vmatprep.subr.bf16.mxu1 %v985_v11  ;;  %v1004_v27 = vld [vmem:[#allocation8 + $0x160] ss:$8 sps:$4 sm:$0xff]   ;;  %v1012_v29 = vld [vmem:[#allocation8 + $0x154] ss:$8 sps:$4 sm:$0xff]   ;;  %v1007_v30 = vld [vmem:[#allocation8 + $0x50] ss:$8 sps:$4 sm:$0xff]  }
  0x33   :  { %v1010_v31 = vld [vmem:[#allocation8 + $0x150] ss:$8 sps:$4 sm:$0xff]   ;;  %v1015_v32 = vld [vmem:[#allocation8 + $0x44] ss:$8 sps:$4 sm:$0xff]   ;;  %v1013_v34 = vld [vmem:[#allocation8 + $0x40] ss:$8 sps:$4 sm:$0xff]  }
  0x34   :  { %206 = vmatpush1.bf16.msra.mxu0 %v987_v12  ;;  %v1018_v33 = vld [vmem:[#allocation8 + $0x144] ss:$8 sps:$4 sm:$0xff]   ;;  %v1016_v35 = vld [vmem:[#allocation8 + $0x140] ss:$8 sps:$4 sm:$0xff]   ;;  %v1021_v36 = vld [vmem:[#allocation8 + $0x34] ss:$8 sps:$4 sm:$0xff]  }
  0x35   :  { %247 = vmatpush1.bf16.msra.mxu1 %v988_v13  ;;  %207 = vmatprep.subr.bf16.mxu0 %v989_v14  ;;  %v1024_v37 = vld [vmem:[#allocation8 + $0x134] ss:$8 sps:$4 sm:$0xff]   ;;  %v1019_v38 = vld [vmem:[#allocation8 + $0x30] ss:$8 sps:$4 sm:$0xff]   ;;  %v1027_v40 = vld [vmem:[#allocation8 + $0x24] ss:$8 sps:$4 sm:$0xff]  }
  0x36   :  { %248 = vmatprep.subr.bf16.mxu1 %v991_v15  ;;  %v1022_v39 = vld [vmem:[#allocation8 + $0x130] ss:$8 sps:$4 sm:$0xff]   ;;  %v1030_v41 = vld [vmem:[#allocation8 + $0x124] ss:$8 sps:$4 sm:$0xff]   ;;  %v1025_v42 = vld [vmem:[#allocation8 + $0x20] ss:$8 sps:$4 sm:$0xff]  }
  0x37   :  { %v1028_v43 = vld [vmem:[#allocation8 + $0x120] ss:$8 sps:$4 sm:$0xff]   ;;  %v1033_v44 = vld [vmem:[#allocation8 + $0x14] ss:$8 sps:$4 sm:$0xff]   ;;  %v1031_v46 = vld [vmem:[#allocation8 + $0x10] ss:$8 sps:$4 sm:$0xff]  }
  0x38   :  { %208 = vmatpush1.bf16.msra.mxu0 %v993_v16  ;;  %v1036_v45 = vld [vmem:[#allocation8 + $0x114] ss:$8 sps:$4 sm:$0xff]   ;;  %v1034_v47 = vld [vmem:[#allocation8 + $0x110] ss:$8 sps:$4 sm:$0xff]   ;;  %v1039_v48 = vld [vmem:[#allocation8 + $0x4] ss:$8 sps:$4 sm:$0xff]  }
  0x39   :  { %249 = vmatpush1.bf16.msra.mxu1 %v994_v17  ;;  %683 = vmatprep.subr.bf16.mxu0 %v997_v19  ;;  %v1042_v49 = vld [vmem:[#allocation8 + $0x104] ss:$8 sps:$4 sm:$0xff]   ;;  %v1037_v50 = vld [vmem:[#allocation8] ss:$8 sps:$4 sm:$0xff]   ;;  %v1045_v52 = vld [vmem:[#allocation8 + $0xf4] ss:$8 sps:$4 sm:$0xff]  }
  0x3a   :  { %724 = vmatprep.subr.bf16.mxu1 %v1000_v20  ;;  %v1040_v51 = vld [vmem:[#allocation8 + $0x100] ss:$8 sps:$4 sm:$0xff]   ;;  %v1048_v53 = vld [vmem:[#allocation8 + $0x1f4] ss:$8 sps:$4 sm:$0xff]   ;;  %v1043_v54 = vld [vmem:[#allocation8 + $0xf0] ss:$8 sps:$4 sm:$0xff]   ;;  %v89_v20 = vlaneseq }
  0x3b   :  { %895 = vmatmul.mubr.msk.bf16.vlgmr.msra.gmra.mxu0 %vm189_vm0, %v70_v21  ;;  %v1046_v55 = vld [vmem:[#allocation8 + $0x1f0] ss:$8 sps:$4 sm:$0xff]   ;;  %v1051_v56 = vld [vmem:[#allocation8 + $0xe4] ss:$8 sps:$4 sm:$0xff]   ;;  %v1049_v58 = vld [vmem:[#allocation8 + $0xe0] ss:$8 sps:$4 sm:$0xff]  }
  0x3c   :  { %896 = vmatmul.mubr.msk.bf16.vlgmr.msra.gmra.mxu1 %vm189_vm0, %v70_v21  ;;  %684 = vmatpush1.bf16.msra.mxu0 %v995_v22  ;;  %v1054_v57 = vld [vmem:[#allocation8 + $0x1e4] ss:$8 sps:$4 sm:$0xff]   ;;  %v1052_v59 = vld [vmem:[#allocation8 + $0x1e0] ss:$8 sps:$4 sm:$0xff]   ;;  %v1057_v60 = vld [vmem:[#allocation8 + $0xd4] ss:$8 sps:$4 sm:$0xff]  }
  0x3d   :  { %725 = vmatpush1.bf16.msra.mxu1 %v998_v23  ;;  %685 = vmatprep.subr.bf16.mxu0 %v1003_v24  ;;  %v1060_v61 = vld [vmem:[#allocation8 + $0x1d4] ss:$8 sps:$4 sm:$0xff]   ;;  %v1055_v62 = vld [vmem:[#allocation8 + $0xd0] ss:$8 sps:$4 sm:$0xff]   ;;  %v1063_v0 = vld [vmem:[#allocation8 + $0xc4] ss:$8 sps:$4 sm:$0xff]  }
  0x3e   :  { %726 = vmatprep.subr.bf16.mxu1 %v1006_v25  ;;  %v1058_v63 = vld [vmem:[#allocation8 + $0x1d0] ss:$8 sps:$4 sm:$0xff]   ;;  %v1066_v1 = vld [vmem:[#allocation8 + $0x1c4] ss:$8 sps:$4 sm:$0xff]   ;;  %v1061_v2 = vld [vmem:[#allocation8 + $0xc0] ss:$8 sps:$4 sm:$0xff]  }
  0x3f   :  { %v1064_v3 = vld [vmem:[#allocation8 + $0x1c0] ss:$8 sps:$4 sm:$0xff]   ;;  %v1069_v4 = vld [vmem:[#allocation8 + $0xb4] ss:$8 sps:$4 sm:$0xff]   ;;  %v1067_v6 = vld [vmem:[#allocation8 + $0xb0] ss:$8 sps:$4 sm:$0xff]  }
  0x40   :  { %686 = vmatpush1.bf16.msra.mxu0 %v1001_v26  ;;  %v1072_v5 = vld [vmem:[#allocation8 + $0x1b4] ss:$8 sps:$4 sm:$0xff]   ;;  %v1070_v7 = vld [vmem:[#allocation8 + $0x1b0] ss:$8 sps:$4 sm:$0xff]   ;;  %v1075_v8 = vld [vmem:[#allocation8 + $0xa4] ss:$8 sps:$4 sm:$0xff]  }
  0x41   :  { %727 = vmatpush1.bf16.msra.mxu1 %v1004_v27  ;;  %687 = vmatprep.subr.bf16.mxu0 %v1009_v28  ;;  %v1078_v9 = vld [vmem:[#allocation8 + $0x1a4] ss:$8 sps:$4 sm:$0xff]   ;;  %v1073_v10 = vld [vmem:[#allocation8 + $0xa0] ss:$8 sps:$4 sm:$0xff]   ;;  %v1081_v12 = vld [vmem:[#allocation8 + $0x94] ss:$8 sps:$4 sm:$0xff]  }
  0x42   :  { %728 = vmatprep.subr.bf16.mxu1 %v1012_v29  ;;  %v1076_v11 = vld [vmem:[#allocation8 + $0x1a0] ss:$8 sps:$4 sm:$0xff]   ;;  %v1084_v13 = vld [vmem:[#allocation8 + $0x194] ss:$8 sps:$4 sm:$0xff]   ;;  %v1079_v14 = vld [vmem:[#allocation8 + $0x90] ss:$8 sps:$4 sm:$0xff]  }
  0x43   :  { %v1082_v15 = vld [vmem:[#allocation8 + $0x190] ss:$8 sps:$4 sm:$0xff]   ;;  %v1087_v16 = vld [vmem:[#allocation8 + $0x84] ss:$8 sps:$4 sm:$0xff]   ;;  %v1085_v18 = vld [vmem:[#allocation8 + $0x80] ss:$8 sps:$4 sm:$0xff]  }
  0x44   :  { %688 = vmatpush1.bf16.msra.mxu0 %v1007_v30  ;;  %v1090_v17 = vld [vmem:[#allocation8 + $0x184] ss:$8 sps:$4 sm:$0xff]   ;;  %v1088_v19 = vld [vmem:[#allocation8 + $0x180] ss:$8 sps:$4 sm:$0xff]   ;;  %v90_v21 = vshrl.u32 %v89_v20, 7 }
  0x45   :  { %729 = vmatpush1.bf16.msra.mxu1 %v1010_v31  ;;  %689 = vmatprep.subr.bf16.mxu0 %v1015_v32  ;;  %v87_v24 = vld [vmem:[%s1258_s2] sm:$0xf] }
  0x46   :  { %730 = vmatprep.subr.bf16.mxu1 %v1018_v33  ;;  %v1238_v22 = vsub.s32 0, %v90_v21  ;;  %v99_v23 = vsub.s32 2, %v90_v21  ;;  %v95_v25 = vsub.s32 1, %v90_v21  ;;  %v103_v26 = vsub.s32 3, %v90_v21 }
  0x48   :  { %690 = vmatpush1.bf16.msra.mxu0 %v1013_v34  ;;  %v92_v27 = vrot.slane %v87_v24, %v1238_v22  ;;  %v100_v28 = vrot.slane %v87_v24, %v99_v23  ;;  %v96_v29 = vrot.slane %v87_v24, %v95_v25  ;;  %v104_v30 = vrot.slane %v87_v24, %v103_v26 }
  0x49   :  { %731 = vmatpush1.bf16.msra.mxu1 %v1016_v35  ;;  %691 = vmatprep.subr.bf16.mxu0 %v1021_v36 }
  0x4a   :  { %732 = vmatprep.subr.bf16.mxu1 %v1024_v37 }
  0x4c   :  { %692 = vmatpush1.bf16.msra.mxu0 %v1019_v38 }
  0x4d   :  { %733 = vmatpush1.bf16.msra.mxu1 %v1022_v39  ;;  %693 = vmatprep.subr.bf16.mxu0 %v1027_v40 }
  0x4e   :  { %734 = vmatprep.subr.bf16.mxu1 %v1030_v41 }
  0x50   :  { %694 = vmatpush1.bf16.msra.mxu0 %v1025_v42 }
  0x51   :  { %735 = vmatpush1.bf16.msra.mxu1 %v1028_v43  ;;  %695 = vmatprep.subr.bf16.mxu0 %v1033_v44 }
  0x52   :  { %736 = vmatprep.subr.bf16.mxu1 %v1036_v45 }
  0x54   :  { %696 = vmatpush1.bf16.msra.mxu0 %v1031_v46 }
  0x55   :  { %737 = vmatpush1.bf16.msra.mxu1 %v1034_v47  ;;  %697 = vmatprep.subr.bf16.mxu0 %v1039_v48 }
  0x56   :  { %738 = vmatprep.subr.bf16.mxu1 %v1042_v49 }
  0x58   :  { %698 = vmatpush1.bf16.msra.mxu0 %v1037_v50 }
  0x59   :  { %739 = vmatpush1.bf16.msra.mxu1 %v1040_v51  ;;  %699 = vmatprep.subr.bf16.mxu0 %v1045_v52 }
  0x5a   :  { %740 = vmatprep.subr.bf16.mxu1 %v1048_v53 }
  0x5c   :  { %700 = vmatpush2.bf16.msra.mxu0 %v1043_v54 }
  0x5d   :  { %741 = vmatpush2.bf16.msra.mxu1 %v1046_v55  ;;  %701 = vmatprep.subr.bf16.mxu0 %v1051_v56  ;;  %v769_v55 = vld [vmem:[%s1261_s5] sm:$0x3] }
  0x5e   :  { %742 = vmatprep.subr.bf16.mxu1 %v1054_v57  ;;  %v788_v56 = vrot.slane %v769_v55, %v95_v25  ;;  %v770_v57 = vld [vmem:[#allocation2] sm:$0x1] }
  0x5f   :  { %773 = vperm.xlu0 %970, %v770_v57  }
  0x60   :  { %702 = vmatpush2.bf16.msra.mxu0 %v1049_v58  ;;  %v351_v58 = vld [vmem:[%s1260_s4] sm:$0x3]  ;;  %s1185_s4 = smov [#allocation9]  }
  0x61   :  { %743 = vmatpush2.bf16.msra.mxu1 %v1052_v59  ;;  %703 = vmatprep.subr.bf16.mxu0 %v1057_v60  ;;  %v356_v59 = vrot.slane %v351_v58, %v1238_v22  ;;  %v360_v60 = vrot.slane %v351_v58, %v95_v25  ;;  %s869_s5 = sshll.u32 %s1185_s4, 4  ;;  %s870_s5 = int_to_ptr.vmem [resolvable:$true] %s869_s5 }
  0x62   :  { %744 = vmatprep.subr.bf16.mxu1 %v1060_v61  ;;  %s1151_s23 = scalar_lea.vmem %s870_s5, 16  ;;  %s1155_s24 = scalar_lea.vmem %s870_s5, 32 }
  0x63   :  { %p1152_p1 = scmp.ne.s32.totalorder %s870_s5, %s1151_s23  ;;  %p1156_p2 = scmp.lt.s32.totalorder %s870_s5, %s870_s5 }
  0x64   :  { %704 = vmatpush2.bf16.msra.mxu0 %v1055_v62  ;;  %p1157_p3 = scmp.lt.s32.totalorder %s1155_s24, %s1151_s23 }
  0x65   :  { %745 = vmatpush2.bf16.msra.mxu1 %v1058_v63  ;;  %705 = vmatprep.subr.bf16.mxu0 %v1063_v0 }
  0x66   :  { %746 = vmatprep.subr.bf16.mxu1 %v1066_v1  ;;  %p1158_p4 = por %p1157_p3, %p1156_p2 }
  0x68   :  { %706 = vmatpush2.bf16.msra.mxu0 %v1061_v2  ;;  %p1159_p5 = pnand %p1158_p4, %p1152_p1 }
  0x69   :  { %747 = vmatpush2.bf16.msra.mxu1 %v1064_v3  ;;  %707 = vmatprep.subr.bf16.mxu0 %v1069_v4 }
  0x6a   :  { %748 = vmatprep.subr.bf16.mxu1 %v1072_v5 }
  0x6c   :  { %708 = vmatpush2.bf16.msra.mxu0 %v1067_v6 }
  0x6d   :  { %749 = vmatpush2.bf16.msra.mxu1 %v1070_v7  ;;  %709 = vmatprep.subr.bf16.mxu0 %v1075_v8 }
  0x6e   :  { %750 = vmatprep.subr.bf16.mxu1 %v1078_v9 }
  0x70   :  { %710 = vmatpush2.bf16.msra.mxu0 %v1073_v10 }
  0x71   :  { %751 = vmatpush2.bf16.msra.mxu1 %v1076_v11  ;;  %711 = vmatprep.subr.bf16.mxu0 %v1081_v12 }
  0x72   :  { %752 = vmatprep.subr.bf16.mxu1 %v1084_v13  ;;  %v784_v13 = vrot.slane %v769_v55, %v1238_v22 }
  0x74   :  { %712 = vmatpush2.bf16.msra.mxu0 %v1079_v14 }
  0x75   :  { %753 = vmatpush2.bf16.msra.mxu1 %v1082_v15  ;;  %713 = vmatprep.subr.bf16.mxu0 %v1087_v16 }
  0x76   :  { %754 = vmatprep.subr.bf16.mxu1 %v1090_v17 }
  0x78   :  { %714 = vmatpush2.bf16.msra.mxu0 %v1085_v18 }
  0x79   :  { %755 = vmatpush2.bf16.msra.mxu1 %v1088_v19 }
  0xda   :  { %v774_v14 = vpop.permute.xlu0 %773 }
  0xdb   :  { %v779_v15 = vrot.slane %v774_v14, %v1238_v22 }
  0xfb   :  { %v227_v31 = vpop.f32.mrf.mxu0 }
  0xfc   :  { %v268_v32 = vpop.f32.mrf.mxu1  ;;  %v228_v33 = vadd.f32 %v227_v31, %v92_v27 }
  0xfd   :  { %v269_v34 = vadd.f32 %v268_v32, %v100_v28  ;;  %v229_v35 = vpop.f32.mrf.mxu0 }
  0xfe   :  { %v270_v36 = vpop.f32.mrf.mxu1  ;;  %v275_v37 = vmul.f32 0.2, %v228_v33  ;;  %v230_v39 = vadd.f32 %v229_v35, %v96_v29 }
  0xff   :  { %v277_v38 = vmul.f32 0.2, %v269_v34  ;;  %v271_v40 = vadd.f32 %v270_v36, %v104_v30  ;;  %v231_v41 = vpop.f32.mrf.mxu0 }
 0x100   :  { %v272_v42 = vpop.f32.mrf.mxu1  ;;  %v276_v43 = vmul.f32 0.2, %v230_v39  ;;  %v279_v45 = vmax.f32 %v228_v33, %v275_v37 }
 0x101   :  { %v278_v44 = vmul.f32 0.2, %v271_v40  ;;  %v281_v46 = vmax.f32 %v269_v34, %v277_v38  ;;  %v232_v47 = vpop.f32.mrf.mxu0 }
 0x102   :  { %v273_v48 = vpop.f32.mrf.mxu1  ;;  %v280_v49 = vmax.f32 %v230_v39, %v276_v43  ;;  %v283_v53 = vpack.c.bf16 %v279_v45, %v279_v45 }
 0x103   :  { %v282_v50 = vmax.f32 %v271_v40, %v278_v44  ;;  %v285_v54 = vpack.c.bf16 %v281_v46, %v281_v46 }
 0x104   :  { %v284_v51 = vpack.c.bf16 %v280_v49, %v280_v49 }
 0x105   :  { %v286_v52 = vpack.c.bf16 %v282_v50, %v282_v50 }
 0x106   :  { %715 = vmatprep.mubr.bf16.mxu0 %v284_v51 }
 0x107   :  { %756 = vmatprep.mubr.bf16.mxu1 %v286_v52  ;;  %716 = vmatmul.mubr.bf16.vlgmr.msra.gmra.mxu0 %v283_v53 }
 0x108   :  { %757 = vmatmul.mubr.bf16.vlgmr.msra.gmra.mxu1 %v285_v54  ;;  %855 = vmatprep.mubr.f32.mxu0 %v788_v56 }
 0x1c7   :  { %v717_v61 = vpop.f32.mrf.mxu0 }
 0x1c8   :  { %v758_v62 = vpop.f32.mrf.mxu1  ;;  %v718_v63 = vadd.f32 %v717_v61, %v356_v59 }
 0x1c9   :  { %v719_v0 = vpop.f32.mrf.mxu0 }
 0x1ca   :  { %v760_v1 = vpop.f32.mrf.mxu1  ;;  %v759_v2 = vadd.f32 %v758_v62, %v718_v63  ;;  %v720_v3 = vadd.f32 %v719_v0, %v360_v60 }
 0x1cb   :  { %v721_v4 = vpop.f32.mrf.mxu0 }
 0x1cc   :  { %v762_v5 = vpop.f32.mrf.mxu1  ;;  %v761_v6 = vadd.f32 %v760_v1, %v720_v3  ;;  %v765_v7 = vmul.f32 0.2, %v759_v2 }
 0x1cd   :  { %v722_v8 = vpop.f32.mrf.mxu0 }
 0x1ce   :  { %v763_v9 = vpop.f32.mrf.mxu1  ;;  %v766_v10 = vmul.f32 0.2, %v761_v6  ;;  %v767_v12 = vmax.f32 %v759_v2, %v765_v7 }
 0x1d0   :  { %v768_v11 = vmax.f32 %v761_v6, %v766_v10 }
 0x1d2   :  { %821 = vmatprep.subr.mxu0 %v768_v11 }
 0x1d3   :  { %822 = vmatpush1.xpose.msra.mxu0 %v767_v12 }
 0x1d6   :  { %856 = vmatmul.mubr.f32.vlgmr.msra.gmra.mxu0 %v784_v13 }
 0x296   :  { %v857_v16 = vpop.f32.mrf.mxu0 }
 0x297   :  { %v858_v17 = vadd.f32 %v857_v16, %v779_v15 }
 0x298   :  { %v859_v18 = vpop.f32.mrf.mxu0 }
 0x299   :  { %862 = vst.msk [vmem:[#allocation9] sm:$0x1] %vm861_vm1, %v858_v17 }
 0x29a   :  { %1162 = shalt.err (!%p1159_p5)
}
 0x29b   :  { %872 = dma.vmem_to_hbm [thread:$0]  %s870_s5, 16, %s1263_s7, [#allocation5]  }
 0x29c   :  { %1175 = dma.done.wait [#allocation5], 16  }
 0x29d   :  { %1176 = vsyncadd [#allocation5], 4294967280 }
 0x29e   :  { %876 = vsyncpa [#allocation4], 1 }
 0x29f   :  { %877 = vsyncpa [#allocation7], 1 }
 0x2a0   :  { %878 = vsyncpa [#allocation5], 1 }

</bundles_post_ra>
